<compile_context>
chip_gen: v5e
topology: v5e:2x2
jax: 0.10.0
libtpu: 0.0.40
codegen_flags: <defaults>
</compile_context>

<pallas_src>
import functools

import jax
import jax.numpy as jnp
from jax.experimental import pallas as pl
from jax.experimental.pallas import tpu as pltpu

_MIB = 1024 * 1024


def _round_up(x, m):
    return ((x + m - 1) // m) * m


def _tpu_vmem_info():
    """(physical_vmem_bytes, usable_cap_bytes). Conservative default = v7x."""
    phys = 64 * _MIB
    try:
        info = pltpu.get_tpu_info()
        phys = int(getattr(info, "vmem_capacity_bytes", phys))
    except Exception:
        pass
    # Leave compiler-internal scratch headroom: >=8 MiB or 1/8 of physical.
    usable = phys - max(8 * _MIB, phys // 8)     # v7x: ~56 MiB, v5e/v6e: ~112 MiB
    return phys, usable


def _value_head_kernel(x_ref, w1_ref, b1_ref, w2_ref, b2_ref, o_ref):
    # x_ref : (tm, H)    f32 or bf16
    # w1_ref: (H, 128)   f32 or bf16 (resident, single-buffered)
    # b1_ref: (1, 128)   f32
    # w2_ref: (1, 128)   row-major copy of the (128, 1) second-layer weight
    # b2_ref: (1, 1)     f32 scalar in SMEM
    # o_ref : (1, 1, tm) f32, lane-dense output row for this tile
    h = jnp.dot(x_ref[...], w1_ref[...], preferred_element_type=jnp.float32)
    h = jnp.tanh(h + b1_ref[...].astype(jnp.float32))             # (tm, 128) f32
    # 128 -> 1 projection on VPU/XLU (free slots); NOT the MXU.
    y = jnp.sum(h * w2_ref[...].astype(jnp.float32), axis=-1)     # (tm,)
    o_ref[...] = (y + b2_ref[0, 0]).reshape(1, 1, -1)


@functools.partial(jax.jit, static_argnames=("tm", "single_buffer_weights"))
def _value_head_impl(hidden, w1, b1, w2, b2, *, tm, single_buffer_weights):
    B, S, H = hidden.shape
    M = B * S
    inner = w1.shape[1]                           # 128
    x = hidden.reshape(M, H)
    w2_row = w2.reshape(1, inner)                 # (128,1) -> (1,128) lane row
    b1r = b1.reshape(1, inner).astype(jnp.float32)
    b2r = b2.reshape(1, 1).astype(jnp.float32)

    phys_vmem, vmem_cap = _tpu_vmem_info()
    x_b = x.dtype.itemsize
    w1_b = w1.dtype.itemsize

    if tm is None:
        # Adaptive row tile: ~4 MiB per x DMA step; ~8 MiB on v7x (faster HBM,
        # so the fixed per-step overhead is a larger fraction of wall time).
        target = 8 * _MIB if phys_vmem <= 64 * _MIB else 4 * _MIB
        tm = max(256, min(2048, (target // max(1, H * x_b)) // 256 * 256))
    assert tm % 8 == 0, "row tile must be a multiple of the 8-sublane vreg height"
    tm_eff = min(tm, _round_up(M, 8))             # don't over-allocate for tiny M

    n_w1_buf = 1 if single_buffer_weights else 2

    def footprint(t):
        return (2 * t * H * x_b                     # double-buffered x tile
                + n_w1_buf * H * inner * w1_b       # resident w1
                + 6 * 8 * 128 * 4                   # b1 / w2 rows, misc
                + 2 * 8 * max(t, 128) * 4)          # f32 output rows

    # Graceful degrade: shrink tm until the estimate fits the generation's cap
    # instead of silently clamping the limit and failing VMEM allocation.
    while tm_eff > 8 and footprint(tm_eff) > vmem_cap:
        tm_eff = max(8, _round_up(tm_eff // 2, 8))
    # TODO(synk): if even tm_eff=256 + w1 overflows the cap (H >~ 16K f32 on
    # v7x 64 MiB), add a K grid axis ('arbitrary', last) with a (tm,128) f32
    # VMEM accumulator + pl.when init/finalize instead of shrinking tm further.

    nt = pl.cdiv(M, tm_eff)
    vmem_limit = int(min(vmem_cap, max(32 * _MIB, int(1.5 * footprint(tm_eff)))))

    cost = pl.CostEstimate(
        flops=2 * nt * tm_eff * H * inner + 4 * nt * tm_eff * inner,
        transcendentals=nt * tm_eff * inner,
        bytes_accessed=(nt * tm_eff * H * x_b
                        + H * inner * w1_b
                        + nt * tm_eff * 4),
    )

    # Constant-index weights: single-buffered when supported.
    pmode = pl.Buffered(1) if single_buffer_weights else None

    out3d = pl.pallas_call(
        _value_head_kernel,
        out_shape=jax.ShapeDtypeStruct((nt, 1, tm_eff), jnp.float32),
        grid_spec=pltpu.PrefetchScalarGridSpec(
            num_scalar_prefetch=0,
            grid=(nt,),
            in_specs=[
                # TODO(synk): sweep pipeline_mode=pl.Buffered(3) here on v7x to
                # hide DMA issue latency at step boundaries.
                pl.BlockSpec((tm_eff, H), lambda i: (i, 0)),                   # x tile
                pl.BlockSpec((H, inner), lambda i: (0, 0), pipeline_mode=pmode),  # w1
                pl.BlockSpec((1, inner), lambda i: (0, 0), pipeline_mode=pmode),  # b1
                pl.BlockSpec((1, inner), lambda i: (0, 0), pipeline_mode=pmode),  # w2 row
                pl.BlockSpec(memory_space=pltpu.MemorySpace.SMEM),             # b2 scalar
            ],
            out_specs=pl.BlockSpec((1, 1, tm_eff), lambda i: (i, 0, 0)),       # lane-dense
        ),
        compiler_params=pltpu.CompilerParams(
            # TODO(synk): verify the row-tile grid shards across both v7x TCs;
            # if a single TC runs the whole grid, switch to (pltpu.CORE_PARALLEL,).
            dimension_semantics=("parallel",),
            vmem_limit_bytes=vmem_limit,
        ),
        cost_estimate=cost,
    )(x, w1, b1r, w2_row, b2r)

    out = out3d.reshape(-1)[:M].reshape(B, S, 1)
    return out.astype(hidden.dtype)


def value_head(hidden, w1, b1, w2, b2, *, tm=None):
    """hidden: (batch, seq, H); w1: (H,128); b1: (1,128); w2: (128,1); b2: (1,1).

    Returns (batch, seq, 1) in hidden.dtype (f32 accumulation in-kernel).
    Production callers should cast hidden/w1 to bfloat16 upstream — x is >99%
    of HBM traffic and halving it is ~2x wall-clock on every TPU generation.
    """
    try:
        return _value_head_impl(hidden, w1, b1, w2, b2, tm=tm,
                                single_buffer_weights=True)
    except Exception:
        # Fallback if pipeline_mode=pl.Buffered(1) is rejected by this
        # jax/libtpu version: default double-buffered weight specs.
        return _value_head_impl(hidden, w1, b1, w2, b2, tm=tm,
                                single_buffer_weights=False)


def init_value_head_params(key, hidden_size, inner=128):
    """Deterministic init mimicking nn.Linear's uniform(-1/sqrt(fan_in), +)."""
    k1, k2, k3, k4 = jax.random.split(key, 4)
    bound1 = 1.0 / jnp.sqrt(hidden_size)
    bound2 = 1.0 / jnp.sqrt(inner)
    w1 = jax.random.uniform(k1, (hidden_size, inner), jnp.float32, -bound1, bound1)
    b1 = jax.random.uniform(k2, (1, inner), jnp.float32, -bound1, bound1)
    w2 = jax.random.uniform(k3, (inner, 1), jnp.float32, -bound2, bound2)
    b2 = jax.random.uniform(k4, (1, 1), jnp.float32, -bound2, bound2)
    return w1, b1, w2, b2


def value_head_ref(hidden, w1, b1, w2, b2):
    h = jnp.tanh(hidden @ w1 + b1[0])
    return h @ w2 + b2[0]


if __name__ == "__main__":
    key = jax.random.PRNGKey(0)

    # Small shapes consistent with the module's forward: (batch, seq, hidden).
    batch, seq, hidden_size = 2, 8, 32
    k_x, k_p, k_x2 = jax.random.split(key, 3)
    x = jax.random.normal(k_x, (batch, seq, hidden_size), jnp.float32)
    w1, b1, w2, b2 = init_value_head_params(k_p, hidden_size)

    # 1) f32 path, single (ragged) tile — tight semantic check.
    out = jax.block_until_ready(value_head(x, w1, b1, w2, b2))
    ref = value_head_ref(x, w1, b1, w2, b2)
    assert out.shape == (batch, seq, 1), out.shape
    assert jnp.allclose(out, ref, atol=1e-5, rtol=1e-5), float(jnp.abs(out - ref).max())

    # 2) f32 path, multi-tile grid with ragged last block (exercises the no-pad
    #    cdiv grid, lane-dense output rows, and the post-slice discard).
    batch2, seq2 = 4, 37                              # M = 148 -> 2 tiles of 128
    x2 = jax.random.normal(k_x2, (batch2, seq2, hidden_size), jnp.float32)
    out2 = jax.block_until_ready(value_head(x2, w1, b1, w2, b2, tm=128))
    ref2 = value_head_ref(x2, w1, b1, w2, b2)
    assert out2.shape == (batch2, seq2, 1), out2.shape
    assert jnp.allclose(out2, ref2, atol=1e-5, rtol=1e-5), float(jnp.abs(out2 - ref2).max())

    # 3) bf16 read path for x/w1 (recommended production default; halves the
    #    dominant HBM read); accumulation stays f32 in-kernel.
    out_bf = jax.block_until_ready(
        value_head(x.astype(jnp.bfloat16), w1.astype(jnp.bfloat16), b1, w2, b2))
    err = float(jnp.abs(out_bf.astype(jnp.float32) - ref).max())
    assert jnp.allclose(out_bf.astype(jnp.float32), ref, atol=5e-2, rtol=5e-2), err

    print("KERNEL_OK")
</pallas_src>

<mosaic_0001>
module attributes {stable_mosaic.version = 11 : i64} {
  func.func @_value_head_kernel(%arg0: i32, %arg1: memref<16x32xf32, #tpu.memory_space<vmem>>, %arg2: memref<32x128xf32, #tpu.memory_space<vmem>>, %arg3: memref<1x128xf32, #tpu.memory_space<vmem>>, %arg4: memref<1x128xf32, #tpu.memory_space<vmem>>, %arg5: memref<1x1xf32, #tpu.memory_space<smem>>, %arg6: memref<1x1x16xf32, #tpu.memory_space<vmem>>) attributes {dimension_semantics = [#tpu.dimension_semantics<parallel>], iteration_bounds = array<i64: 1>, scalar_prefetch = 0 : i64, scratch_operands = 0 : i64, tpu.core_type = #tpu.core_type<tc>, window_params = [{transform_indices = @transform_0, window_bounds = array<i64: 16, 32>}, {pipeline_mode = #tpu.pipeline_mode<synchronous>, transform_indices = @transform_1, window_bounds = array<i64: 32, 128>}, {pipeline_mode = #tpu.pipeline_mode<synchronous>, transform_indices = @transform_2, window_bounds = array<i64: 1, 128>}, {pipeline_mode = #tpu.pipeline_mode<synchronous>, transform_indices = @transform_3, window_bounds = array<i64: 1, 128>}, {transform_indices = @transform_4, window_bounds = array<i64: 1, 1>}, {transform_indices = @transform_5, window_bounds = array<i64: 1, 1, 16>}]} {
    %c0 = arith.constant 0 : index
    %c0_0 = arith.constant 0 : index
    %0 = vector.load %arg1[%c0, %c0_0] : memref<16x32xf32, #tpu.memory_space<vmem>>, vector<16x32xf32>
    %c0_1 = arith.constant 0 : index
    %c0_2 = arith.constant 0 : index
    %1 = vector.load %arg2[%c0_1, %c0_2] : memref<32x128xf32, #tpu.memory_space<vmem>>, vector<32x128xf32>
    %cst = arith.constant dense<0.000000e+00> : vector<16x128xf32>
    %2 = tpu.matmul %0, %1, %cst {dimension_numbers = #tpu.dot_dimension_numbers<[1], [0], [0], [1], [0, 0, 1, 1], [], []>} : vector<16x32xf32>, vector<32x128xf32>, vector<16x128xf32> -> vector<16x128xf32>
    %c0_3 = arith.constant 0 : index
    %c0_4 = arith.constant 0 : index
    %3 = vector.load %arg3[%c0_3, %c0_4] : memref<1x128xf32, #tpu.memory_space<vmem>>, vector<1x128xf32>
    %4 = vector.broadcast %3 : vector<1x128xf32> to vector<16x128xf32>
    %5 = arith.addf %2, %4 : vector<16x128xf32>
    %6 = math.tanh %5 : vector<16x128xf32>
    %c0_5 = arith.constant 0 : index
    %c0_6 = arith.constant 0 : index
    %7 = vector.load %arg4[%c0_5, %c0_6] : memref<1x128xf32, #tpu.memory_space<vmem>>, vector<1x128xf32>
    %8 = vector.broadcast %7 : vector<1x128xf32> to vector<16x128xf32>
    %9 = arith.mulf %6, %8 : vector<16x128xf32>
    %cst_7 = arith.constant dense<0.000000e+00> : vector<16xf32>
    %10 = vector.multi_reduction <add>, %9, %cst_7 [1] : vector<16x128xf32> to vector<16xf32>
    %c0_8 = arith.constant 0 : index
    %c0_9 = arith.constant 0 : index
    %11 = memref.load %arg5[%c0_8, %c0_9] : memref<1x1xf32, #tpu.memory_space<smem>>
    %12 = vector.broadcast %11 : f32 to vector<16xf32>
    %13 = arith.addf %10, %12 : vector<16xf32>
    %14 = vector.shape_cast %13 : vector<16xf32> to vector<1x1x16xf32>
    %c0_10 = arith.constant 0 : index
    %c0_11 = arith.constant 0 : index
    %c0_12 = arith.constant 0 : index
    %15 = vector.load %arg6[%c0_10, %c0_11, %c0_12] : memref<1x1x16xf32, #tpu.memory_space<vmem>>, vector<1x1x16xf32>
    tpu.vector_store %arg6[%c0_10, %c0_11, %c0_12], %14 {strides = array<i32>} : memref<1x1x16xf32, #tpu.memory_space<vmem>>, vector<1x1x16xf32>,
    return
  }
  func.func @transform_0(%arg0: i32) -> (i32, i32) {
    %c0_i32 = arith.constant 0 : i32
    %c0_i32_0 = arith.constant 0 : i32
    return %arg0, %c0_i32 : i32, i32
  }
  func.func @transform_1(%arg0: i32) -> (i32, i32) {
    %c0_i32 = arith.constant 0 : i32
    %c0_i32_0 = arith.constant 0 : i32
    %c0_i32_1 = arith.constant 0 : i32
    return %c0_i32, %c0_i32_0 : i32, i32
  }
  func.func @transform_2(%arg0: i32) -> (i32, i32) {
    %c0_i32 = arith.constant 0 : i32
    %c0_i32_0 = arith.constant 0 : i32
    %c0_i32_1 = arith.constant 0 : i32
    return %c0_i32, %c0_i32_0 : i32, i32
  }
  func.func @transform_3(%arg0: i32) -> (i32, i32) {
    %c0_i32 = arith.constant 0 : i32
    %c0_i32_0 = arith.constant 0 : i32
    %c0_i32_1 = arith.constant 0 : i32
    return %c0_i32, %c0_i32_0 : i32, i32
  }
  func.func @transform_4(%arg0: i32) -> (i32, i32) {
    %c0_i32 = arith.constant 0 : i32
    %c0_i32_0 = arith.constant 0 : i32
    %c0_i32_1 = arith.constant 0 : i32
    return %c0_i32, %c0_i32_0 : i32, i32
  }
  func.func @transform_5(%arg0: i32) -> (i32, i32, i32) {
    %c0_i32 = arith.constant 0 : i32
    %c0_i32_0 = arith.constant 0 : i32
    %c0_i32_1 = arith.constant 0 : i32
    return %arg0, %c0_i32, %c0_i32_0 : i32, i32, i32
  }
}

module attributes {stable_mosaic.version = 11 : i64} {
  func.func @_value_head_kernel(%arg0: i32, %arg1: memref<16x32xf32, #tpu.memory_space<vmem>>, %arg2: memref<32x128xf32, #tpu.memory_space<vmem>>, %arg3: memref<1x128xf32, #tpu.memory_space<vmem>>, %arg4: memref<1x128xf32, #tpu.memory_space<vmem>>, %arg5: memref<1x1xf32, #tpu.memory_space<smem>>, %arg6: memref<1x1x16xf32, #tpu.memory_space<vmem>>) attributes {dimension_semantics = [#tpu.dimension_semantics<parallel>], iteration_bounds = array<i64: 1>, scalar_prefetch = 0 : i64, scratch_operands = 0 : i64, tpu.core_type = #tpu.core_type<tc>, window_params = [{transform_indices = @transform_0, window_bounds = array<i64: 16, 32>}, {pipeline_mode = #tpu.pipeline_mode<synchronous>, transform_indices = @transform_1, window_bounds = array<i64: 32, 128>}, {pipeline_mode = #tpu.pipeline_mode<synchronous>, transform_indices = @transform_2, window_bounds = array<i64: 1, 128>}, {pipeline_mode = #tpu.pipeline_mode<synchronous>, transform_indices = @transform_3, window_bounds = array<i64: 1, 128>}, {transform_indices = @transform_4, window_bounds = array<i64: 1, 1>}, {transform_indices = @transform_5, window_bounds = array<i64: 1, 1, 16>}]} {
    %c0 = arith.constant 0 : index
    %c0_0 = arith.constant 0 : index
    %0 = vector.load %arg1[%c0, %c0_0] : memref<16x32xf32, #tpu.memory_space<vmem>>, vector<16x32xf32>
    %c0_1 = arith.constant 0 : index
    %c0_2 = arith.constant 0 : index
    %1 = vector.load %arg2[%c0_1, %c0_2] : memref<32x128xf32, #tpu.memory_space<vmem>>, vector<32x128xf32>
    %cst = arith.constant dense<0.000000e+00> : vector<16x128xf32>
    %2 = tpu.matmul %0, %1, %cst {dimension_numbers = #tpu.dot_dimension_numbers<[1], [0], [0], [1], [0, 0, 1, 1], [], []>} : vector<16x32xf32>, vector<32x128xf32>, vector<16x128xf32> -> vector<16x128xf32>
    %c0_3 = arith.constant 0 : index
    %c0_4 = arith.constant 0 : index
    %3 = vector.load %arg3[%c0_3, %c0_4] : memref<1x128xf32, #tpu.memory_space<vmem>>, vector<1x128xf32>
    %4 = vector.broadcast %3 : vector<1x128xf32> to vector<16x128xf32>
    %5 = arith.addf %2, %4 : vector<16x128xf32>
    %6 = math.tanh %5 : vector<16x128xf32>
    %c0_5 = arith.constant 0 : index
    %c0_6 = arith.constant 0 : index
    %7 = vector.load %arg4[%c0_5, %c0_6] : memref<1x128xf32, #tpu.memory_space<vmem>>, vector<1x128xf32>
    %8 = vector.broadcast %7 : vector<1x128xf32> to vector<16x128xf32>
    %9 = arith.mulf %6, %8 : vector<16x128xf32>
    %cst_7 = arith.constant dense<0.000000e+00> : vector<16xf32>
    %10 = vector.multi_reduction <add>, %9, %cst_7 [1] : vector<16x128xf32> to vector<16xf32>
    %c0_8 = arith.constant 0 : index
    %c0_9 = arith.constant 0 : index
    %11 = memref.load %arg5[%c0_8, %c0_9] : memref<1x1xf32, #tpu.memory_space<smem>>
    %12 = vector.broadcast %11 : f32 to vector<16xf32>
    %13 = arith.addf %10, %12 : vector<16xf32>
    %14 = vector.shape_cast %13 : vector<16xf32> to vector<1x1x16xf32>
    %c0_10 = arith.constant 0 : index
    %c0_11 = arith.constant 0 : index
    %c0_12 = arith.constant 0 : index
    %15 = vector.load %arg6[%c0_10, %c0_11, %c0_12] : memref<1x1x16xf32, #tpu.memory_space<vmem>>, vector<1x1x16xf32>
    tpu.vector_store %arg6[%c0_10, %c0_11, %c0_12], %14 {strides = array<i32>} : memref<1x1x16xf32, #tpu.memory_space<vmem>>, vector<1x1x16xf32>,
    return
  }
  func.func @transform_0(%arg0: i32) -> (i32, i32) {
    %c0_i32 = arith.constant 0 : i32
    %c0_i32_0 = arith.constant 0 : i32
    return %arg0, %c0_i32 : i32, i32
  }
  func.func @transform_1(%arg0: i32) -> (i32, i32) {
    %c0_i32 = arith.constant 0 : i32
    %c0_i32_0 = arith.constant 0 : i32
    %c0_i32_1 = arith.constant 0 : i32
    return %c0_i32, %c0_i32_0 : i32, i32
  }
  func.func @transform_2(%arg0: i32) -> (i32, i32) {
    %c0_i32 = arith.constant 0 : i32
    %c0_i32_0 = arith.constant 0 : i32
    %c0_i32_1 = arith.constant 0 : i32
    return %c0_i32, %c0_i32_0 : i32, i32
  }
  func.func @transform_3(%arg0: i32) -> (i32, i32) {
    %c0_i32 = arith.constant 0 : i32
    %c0_i32_0 = arith.constant 0 : i32
    %c0_i32_1 = arith.constant 0 : i32
    return %c0_i32, %c0_i32_0 : i32, i32
  }
  func.func @transform_4(%arg0: i32) -> (i32, i32) {
    %c0_i32 = arith.constant 0 : i32
    %c0_i32_0 = arith.constant 0 : i32
    %c0_i32_1 = arith.constant 0 : i32
    return %c0_i32, %c0_i32_0 : i32, i32
  }
  func.func @transform_5(%arg0: i32) -> (i32, i32, i32) {
    %c0_i32 = arith.constant 0 : i32
    %c0_i32_0 = arith.constant 0 : i32
    %c0_i32_1 = arith.constant 0 : i32
    return %arg0, %c0_i32, %c0_i32_0 : i32, i32, i32
  }
}

</mosaic_0001>

<bundles_post_ra>
// kernel: _value_head_impl.1
= control target key start
LH: loop header
LB: loop body
LE: loop exit
PB: predicated region body
PF: predicated region fallthrough
CT: control target
= control target key end

     0   :  { %11 = vsyncpa [#allocation4], 0  ;;  %s247_s0 = inlined_call_operand.hbm [shape: f32[16,32], index: 0, kind: input, shape index: {}]   ;;  %s248_s1 = inlined_call_operand.hbm [shape: f32[32,128], index: 1, kind: input, shape index: {}]   ;;  %s249_s2 = inlined_call_operand.vmem [shape: f32[1,128], index: 2, kind: input, shape index: {}]   ;;  %s250_s3 = inlined_call_operand.vmem [shape: f32[1,128], index: 3, kind: input, shape index: {}]   ;;  %s251_s4 = inlined_call_operand.<no memory space> [shape: f32[1,1], index: 4, kind: input, shape index: {}]   ;;  %s252_s5 = inlined_call_operand.vmem [shape: f32[1,1,16], index: 5, kind: output, shape index: {}]  }
   0x1   :  { %s17_s20 = sshll.u32 %s247_s0, 4  ;;  %s18_s20 = int_to_ptr.hbm [resolvable:$true] %s17_s20 }
   0x2   :  { %12 = vsyncpa [#allocation6], 0  ;;  %s195_s21 = smov [#allocation3]   ;;  %s30_s25 = sshll.u32 %s248_s1, 4  ;;  %s31_s25 = int_to_ptr.hbm [resolvable:$true] %s30_s25 }
   0x3   :  { %s19_s22 = sshll.u32 %s195_s21, 4  ;;  %s196_s26 = smov 128   ;;  %s20_s22 = int_to_ptr.vmem [resolvable:$true] %s19_s22 }
   0x4   :  { %s197_s27 = smov 8   ;;  %s198_s28 = smov [#allocation5]  }
   0x5   :  { %25 = dma.hbm_to_vmem [thread:$0]  %s18_s20, 256, %s20_s22, [#allocation4], %s196_s26, %s196_s26, %s197_s27  }
   0x6   :  { %s32_s29 = sshll.u32 %s198_s28, 4  ;;  %s33_s29 = int_to_ptr.vmem [resolvable:$true] %s32_s29 }
   0x7   :  { %38 = dma.hbm_to_vmem [thread:$0]  %s31_s25, 512, %s33_s29, [#allocation6], %s196_s26, %s196_s26, %s197_s27  }
   0x8   :  { %191 = dma.done.wait [#allocation4], 256  }
   0x9   :  { %192 = vsyncadd [#allocation4], 4294967040 }
   0xa   :  { %193 = dma.done.wait [#allocation6], 512  }
   0xb   :  { %194 = vsyncadd [#allocation6], 4294966784  ;;  %v58_v0 = vld [vmem:[#allocation5 + $0x18] sm:$0xff]  ;;  %v57_v1 = vld [vmem:[#allocation5 + $0x10] sm:$0xff]  ;;  %vm63_vm0 = vcmask 261120   ;;  %v111_v17 = vlaneseq  ;;  %v106_v18 = vstv %s251_s4  ;;  %vm116_vm1 = vcmask 130112  }
   0xc   :  { %82 = vmatpush.msra.mxu0 %v58_v0  ;;  %129 = vmatpush.msra.mxu1 %v58_v0  ;;  %v56_v2 = vld [vmem:[#allocation5 + $0x8] sm:$0xff]  ;;  %v55_v3 = vld [vmem:[#allocation5] sm:$0xff]  ;;  %v53_v4 = vld [vmem:[#allocation3] sm:$0xff]  ;;  %vm119_vm2 = vcmask 122880  }
   0xd   :  { %v54_v5 = vld [vmem:[#allocation3 + $0x8] sm:$0xff]  ;;  %v137_v6 = vld [vmem:[%s249_s2] ss:$0 sm:$0xff]  ;;  %v112_v19 = vand.u32 127, %v111_v17 }
   0xe   :  { %83 = vmatpush.msra.mxu0 %v57_v1  ;;  %130 = vmatpush.msra.mxu1 %v57_v1  ;;  %v138_v11 = vld [vmem:[%s250_s3] ss:$0 sm:$0xff] }
   0xf   :  { %v114_v21 = vadd.s32 4294967288, %v112_v19 }
  0x10   :  { %84 = vmatpush.msra.mxu0 %v56_v2  ;;  %131 = vmatpush.msra.mxu1 %v56_v2 }
  0x12   :  { %85 = vmatpush.msra.mxu0 %v55_v3  ;;  %132 = vmatpush.msra.mxu1 %v55_v3 }
  0x13   :  { %127 = vmatmul.msk.f32.vlgmr.msra.gmra.mxu0 %vm63_vm0, %v53_v4  ;;  %128 = vmatmul.msk.f32.vlgmr.msra.gmra.mxu1 %vm63_vm0, %v54_v5 }
  0x90   :  { %v87_v7 = vpop.f32.mrf.mxu0  ;;  %v90_v8 = vpop.f32.mrf.mxu1 }
  0x91   :  { %v88_v9 = vadd.f32 %v137_v6, %v87_v7  ;;  %v91_v10 = vadd.f32 %v137_v6, %v90_v8 }
  0x93   :  { %139 = vtanh.f32 %v88_v9 }
  0x94   :  { %141 = vtanh.f32 %v91_v10 }
  0x99   :  { %v140_v12 = vpop.eup %139 }
  0x9a   :  { %v99_v13 = vmul.f32 %v140_v12, %v138_v11  ;;  %v142_v14 = vpop.eup %141 }
  0x9b   :  { %v100_v15 = vmul.f32 %v142_v14, %v138_v11 }
  0x9c   :  { %101 = vadd.xlane.f32.xlu0 %v99_v13 }
  0xa4   :  { %103 = vadd.xlane.f32.xlu0 %v100_v15 }
 0x10f   :  { %v102_v16 = vpop.xlane.xlu0 %101 }
 0x110   :  { %v107_v20 = vadd.f32 %v106_v18, %v102_v16 }
 0x112   :  { %v113_v24 = vperm.slane %v107_v20, %v112_v19 }
 0x117   :  { %v104_v22 = vpop.xlane.xlu0 %103 }
 0x118   :  { %v108_v23 = vadd.f32 %v106_v18, %v104_v22 }
 0x11a   :  { %v115_v25 = vperm.slane %v108_v23, %v114_v21 }
 0x11c   :  { %v117_v26 = vsel %vm116_vm1, %v115_v25, %v113_v24 }
 0x11d   :  { %120 = vst.msk [vmem:[%s252_s5] sm:$0x1] %vm119_vm2, %v117_v26 }
 0x11e   :  { %125 = vsyncpa [#allocation4], 1 }
 0x11f   :  { %126 = vsyncpa [#allocation6], 1 }

// kernel: _value_head_impl.1
= control target key start
LH: loop header
LB: loop body
LE: loop exit
PB: predicated region body
PF: predicated region fallthrough
CT: control target
= control target key end

     0   :  { %11 = vsyncpa [#allocation4], 0  ;;  %s247_s0 = inlined_call_operand.hbm [shape: f32[16,32], index: 0, kind: input, shape index: {}]   ;;  %s248_s1 = inlined_call_operand.hbm [shape: f32[32,128], index: 1, kind: input, shape index: {}]   ;;  %s249_s2 = inlined_call_operand.vmem [shape: f32[1,128], index: 2, kind: input, shape index: {}]   ;;  %s250_s3 = inlined_call_operand.vmem [shape: f32[1,128], index: 3, kind: input, shape index: {}]   ;;  %s251_s4 = inlined_call_operand.<no memory space> [shape: f32[1,1], index: 4, kind: input, shape index: {}]   ;;  %s252_s5 = inlined_call_operand.vmem [shape: f32[1,1,16], index: 5, kind: output, shape index: {}]  }
   0x1   :  { %s17_s20 = sshll.u32 %s247_s0, 4  ;;  %s18_s20 = int_to_ptr.hbm [resolvable:$true] %s17_s20 }
   0x2   :  { %12 = vsyncpa [#allocation6], 0  ;;  %s195_s21 = smov [#allocation3]   ;;  %s30_s25 = sshll.u32 %s248_s1, 4  ;;  %s31_s25 = int_to_ptr.hbm [resolvable:$true] %s30_s25 }
   0x3   :  { %s19_s22 = sshll.u32 %s195_s21, 4  ;;  %s196_s26 = smov 128   ;;  %s20_s22 = int_to_ptr.vmem [resolvable:$true] %s19_s22 }
   0x4   :  { %s197_s27 = smov 8   ;;  %s198_s28 = smov [#allocation5]  }
   0x5   :  { %25 = dma.hbm_to_vmem [thread:$0]  %s18_s20, 256, %s20_s22, [#allocation4], %s196_s26, %s196_s26, %s197_s27  }
   0x6   :  { %s32_s29 = sshll.u32 %s198_s28, 4  ;;  %s33_s29 = int_to_ptr.vmem [resolvable:$true] %s32_s29 }
   0x7   :  { %38 = dma.hbm_to_vmem [thread:$0]  %s31_s25, 512, %s33_s29, [#allocation6], %s196_s26, %s196_s26, %s197_s27  }
   0x8   :  { %191 = dma.done.wait [#allocation4], 256  }
   0x9   :  { %192 = vsyncadd [#allocation4], 4294967040 }
   0xa   :  { %193 = dma.done.wait [#allocation6], 512  }
   0xb   :  { %194 = vsyncadd [#allocation6], 4294966784  ;;  %v58_v0 = vld [vmem:[#allocation5 + $0x18] sm:$0xff]  ;;  %v57_v1 = vld [vmem:[#allocation5 + $0x10] sm:$0xff]  ;;  %vm63_vm0 = vcmask 261120   ;;  %v111_v17 = vlaneseq  ;;  %v106_v18 = vstv %s251_s4  ;;  %vm116_vm1 = vcmask 130112  }
   0xc   :  { %82 = vmatpush.msra.mxu0 %v58_v0  ;;  %129 = vmatpush.msra.mxu1 %v58_v0  ;;  %v56_v2 = vld [vmem:[#allocation5 + $0x8] sm:$0xff]  ;;  %v55_v3 = vld [vmem:[#allocation5] sm:$0xff]  ;;  %v53_v4 = vld [vmem:[#allocation3] sm:$0xff]  ;;  %vm119_vm2 = vcmask 122880  }
   0xd   :  { %v54_v5 = vld [vmem:[#allocation3 + $0x8] sm:$0xff]  ;;  %v137_v6 = vld [vmem:[%s249_s2] ss:$0 sm:$0xff]  ;;  %v112_v19 = vand.u32 127, %v111_v17 }
   0xe   :  { %83 = vmatpush.msra.mxu0 %v57_v1  ;;  %130 = vmatpush.msra.mxu1 %v57_v1  ;;  %v138_v11 = vld [vmem:[%s250_s3] ss:$0 sm:$0xff] }
   0xf   :  { %v114_v21 = vadd.s32 4294967288, %v112_v19 }
  0x10   :  { %84 = vmatpush.msra.mxu0 %v56_v2  ;;  %131 = vmatpush.msra.mxu1 %v56_v2 }
  0x12   :  { %85 = vmatpush.msra.mxu0 %v55_v3  ;;  %132 = vmatpush.msra.mxu1 %v55_v3 }
  0x13   :  { %127 = vmatmul.msk.f32.vlgmr.msra.gmra.mxu0 %vm63_vm0, %v53_v4  ;;  %128 = vmatmul.msk.f32.vlgmr.msra.gmra.mxu1 %vm63_vm0, %v54_v5 }
  0x90   :  { %v87_v7 = vpop.f32.mrf.mxu0  ;;  %v90_v8 = vpop.f32.mrf.mxu1 }
  0x91   :  { %v88_v9 = vadd.f32 %v137_v6, %v87_v7  ;;  %v91_v10 = vadd.f32 %v137_v6, %v90_v8 }
  0x93   :  { %139 = vtanh.f32 %v88_v9 }
  0x94   :  { %141 = vtanh.f32 %v91_v10 }
  0x99   :  { %v140_v12 = vpop.eup %139 }
  0x9a   :  { %v99_v13 = vmul.f32 %v140_v12, %v138_v11  ;;  %v142_v14 = vpop.eup %141 }
  0x9b   :  { %v100_v15 = vmul.f32 %v142_v14, %v138_v11 }
  0x9c   :  { %101 = vadd.xlane.f32.xlu0 %v99_v13 }
  0xa4   :  { %103 = vadd.xlane.f32.xlu0 %v100_v15 }
 0x10f   :  { %v102_v16 = vpop.xlane.xlu0 %101 }
 0x110   :  { %v107_v20 = vadd.f32 %v106_v18, %v102_v16 }
 0x112   :  { %v113_v24 = vperm.slane %v107_v20, %v112_v19 }
 0x117   :  { %v104_v22 = vpop.xlane.xlu0 %103 }
 0x118   :  { %v108_v23 = vadd.f32 %v106_v18, %v104_v22 }
 0x11a   :  { %v115_v25 = vperm.slane %v108_v23, %v114_v21 }
 0x11c   :  { %v117_v26 = vsel %vm116_vm1, %v115_v25, %v113_v24 }
 0x11d   :  { %120 = vst.msk [vmem:[%s252_s5] sm:$0x1] %vm119_vm2, %v117_v26 }
 0x11e   :  { %125 = vsyncpa [#allocation4], 1 }
 0x11f   :  { %126 = vsyncpa [#allocation6], 1 }

</bundles_post_ra>
